<compile_context>
chip_gen: v5e
topology: v5e:2x2
jax: 0.10.0
libtpu: 0.0.40
codegen_flags: <defaults>
</compile_context>

<pallas_src>
import jax
import jax.numpy as jnp
from jax.experimental import pallas as pl
from jax.experimental.pallas import tpu as pltpu

EPS = 1e-5


def basic_block_kernel(x_ref, mask_ref, w1_ref, w2_ref, gmean_ref,
                       g1_ref, b1_ref, g2_ref, b2_ref, out_ref):
    # x_ref:     (N*H, W*C)   lane-dense input (also the residual identity)
    # mask_ref:  (2, N*H, 1)  0/1 per-image H-border masks: [0] zeroes rows with
    #                         h==0 (for the ky=0 tap), [1] zeroes rows with
    #                         h==H-1 (for the ky=2 tap)
    # w*_ref:    (3, W*C, W*C) block-tridiagonal lane weights, indexed by ky
    # gmean_ref: (W*C, W*C)   group-mean matrix: per-channel reduce over the W
    #                         lane groups, divide by N*H*W, broadcast to lanes
    # g*/b*_ref: (1, W*C)     BN gamma/beta tiled across W
    x = x_ref[...]                                   # fp32, loaded once
    nh = x_ref.shape[0]
    mask_up = mask_ref[0]                            # (NH, 1)
    mask_dn = mask_ref[1]
    gmean = gmean_ref[...]

    def conv3x3(inp, w_ref):
        # ky = 1: no row shift.
        acc = jnp.dot(inp, w_ref[1], preferred_element_type=jnp.float32)
        # ky = 0: row h-1 via sublane roll (XLU) + border mask (VPU); the
        # circular-wrap row is killed by the mask, so this equals zero padding.
        up = pltpu.roll(inp, shift=1, axis=0) * mask_up
        acc = acc + jnp.dot(up, w_ref[0], preferred_element_type=jnp.float32)
        # ky = 2: row h+1 (shift = -1 expressed as NH-1).
        dn = pltpu.roll(inp, shift=nh - 1, axis=0) * mask_dn
        acc = acc + jnp.dot(dn, w_ref[2], preferred_element_type=jnp.float32)
        return acc

    def batchnorm(acc, g_ref, b_ref):
        # Train-mode BN in a single pass.  Sublane reduce first (XLU), then a
        # (1, WC) @ (WC, WC) matmul does the per-channel reduce over the W lane
        # groups + broadcast back to lanes.  Identical result to reducing after
        # the matmul (the gmean matmul is linear), at 1/NH the MXU cost.
        lane_sum = jnp.sum(acc, axis=0, keepdims=True)          # (1, WC)
        lane_sq = jnp.sum(acc * acc, axis=0, keepdims=True)     # (1, WC)
        mean = jnp.dot(lane_sum, gmean, preferred_element_type=jnp.float32)
        ex2 = jnp.dot(lane_sq, gmean, preferred_element_type=jnp.float32)
        var = ex2 - mean * mean                                  # fp32 E[x^2]-E[x]^2
        scale = g_ref[...] * jax.lax.rsqrt(var + EPS)
        shift = b_ref[...] - mean * scale
        return acc * scale + shift

    out1 = jnp.maximum(batchnorm(conv3x3(x, w1_ref), g1_ref, b1_ref), 0.0)
    out2 = batchnorm(conv3x3(out1, w2_ref), g2_ref, b2_ref)
    out_ref[...] = jnp.maximum(out2 + x, 0.0).astype(out_ref.dtype)


# ---------------- wrapper-side constant construction ----------------

def _lane_conv_weights(w_oihw, W):
    """OIHW (Cout, Cin, 3, 3) -> (3, W*Cin, W*Cout) block-tridiagonal lane
    weights. Tap (ky, kx) lands on the block (sub/super)diagonal wi - wo = kx-1;
    missing boundary blocks implement the W-edge zero padding."""
    taps = jnp.transpose(w_oihw, (2, 3, 1, 0)).astype(jnp.float32)  # (3,3,Ci,Co)
    mats = []
    for ky in range(3):
        m = sum(jnp.kron(jnp.eye(W, k=-(kx - 1), dtype=jnp.float32),
                         taps[ky, kx]) for kx in range(3))
        mats.append(m)
    return jnp.stack(mats)


def _border_masks(N, H):
    """(2, N*H, 1) 0/1 masks: [0] zeroes rows where h%H == 0 (no row above in
    this image), [1] zeroes rows where h%H == H-1 (no row below)."""
    h = jnp.arange(N * H) % H
    up = (h != 0).astype(jnp.float32)[:, None]
    dn = (h != H - 1).astype(jnp.float32)[:, None]
    return jnp.stack([up, dn])


def _group_mean_mat(W, C, count):
    """(W*C, W*C) matrix G with G[i,j] = 1/count if i%C == j%C else 0:
    lane_sums @ G = per-channel batch mean broadcast across all lanes."""
    return (jnp.kron(jnp.ones((W, W), jnp.float32),
                     jnp.eye(C, dtype=jnp.float32)) / float(count))


def basic_block_forward(x_nhwc, w1_oihw, g1, b1, w2_oihw, g2, b2):
    N, H, W, C = x_nhwc.shape
    Cout, Cin = w1_oihw.shape[:2]
    assert Cin == C and Cout == C, "identity residual requires inplanes == planes"
    NH, WC = N * H, W * C

    w1_lane = _lane_conv_weights(w1_oihw, W)          # (3, WC, WC)
    w2_lane = _lane_conv_weights(w2_oihw, W)
    masks = _border_masks(N, H)                       # (2, NH, 1)
    gmean = _group_mean_mat(W, C, N * H * W)          # (WC, WC)
    g1t = jnp.tile(g1.astype(jnp.float32), W)[None, :]
    b1t = jnp.tile(b1.astype(jnp.float32), W)[None, :]
    g2t = jnp.tile(g2.astype(jnp.float32), W)[None, :]
    b2t = jnp.tile(b2.astype(jnp.float32), W)[None, :]

    x2d = x_nhwc.astype(jnp.float32).reshape(NH, WC)  # lane-dense slab

    # 2 convs x 3 matmuls of (NH,WC)@(WC,WC) + 2 BNs x 2 tiny (1,WC)@(WC,WC).
    cost = pl.CostEstimate(
        flops=2 * (6 * NH * WC * WC) + 2 * (2 * 2 * WC * WC),
        transcendentals=2 * WC,
        bytes_accessed=4 * (2 * NH * WC + 2 * 3 * WC * WC + WC * WC
                            + 2 * NH + 4 * WC),
    )

    out2d = pl.pallas_call(
        basic_block_kernel,
        out_shape=jax.ShapeDtypeStruct((NH, WC), jnp.float32),
        in_specs=[pl.BlockSpec(memory_space=pltpu.MemorySpace.VMEM)] * 9,
        out_specs=pl.BlockSpec(memory_space=pltpu.MemorySpace.VMEM),
        input_output_aliases={0: 0},   # reuse the x slab buffer for the output
        cost_estimate=cost,
    )(x2d, masks, w1_lane, w2_lane, gmean, g1t, b1t, g2t, b2t)

    return out2d.reshape(N, H, W, C).astype(x_nhwc.dtype)


# ---------------- pure-JAX reference (PyTorch train-mode BasicBlock) ----------------

def reference_forward(x_nhwc, w1_oihw, g1, b1, w2_oihw, g2, b2):
    def conv(x, w_oihw):
        w_hwio = jnp.transpose(w_oihw, (2, 3, 1, 0))
        return jax.lax.conv_general_dilated(
            x, w_hwio, window_strides=(1, 1), padding='SAME',
            dimension_numbers=('NHWC', 'HWIO', 'NHWC'))

    def bn(x, g, b):
        mean = x.mean(axis=(0, 1, 2))
        var = ((x - mean) ** 2).mean(axis=(0, 1, 2))
        return (x - mean) * jax.lax.rsqrt(var + EPS) * g + b

    out = jax.nn.relu(bn(conv(x_nhwc, w1_oihw), g1, b1))
    out = bn(conv(out, w2_oihw), g2, b2)
    return jax.nn.relu(out + x_nhwc)


if __name__ == "__main__":
    # BasicBlock-consistent small shapes (inplanes == planes); W*C = 128 lanes.
    N, C, H, W = 2, 8, 16, 16          # PyTorch input would be NCHW (2, 8, 16, 16)
    key = jax.random.PRNGKey(0)
    kx_, kw1, kw2 = jax.random.split(key, 3)

    x_nchw = jax.random.normal(kx_, (N, C, H, W), jnp.float32)
    x_nhwc = jnp.transpose(x_nchw, (0, 2, 3, 1))

    # Conv weights in PyTorch OIHW layout (Cout, Cin, 3, 3), no bias.
    w1_oihw = 0.1 * jax.random.normal(kw1, (C, C, 3, 3), jnp.float32)
    w2_oihw = 0.1 * jax.random.normal(kw2, (C, C, 3, 3), jnp.float32)

    # BatchNorm affine params (PyTorch default init: weight=1, bias=0).
    g1 = jnp.ones((C,), jnp.float32)
    b1 = jnp.zeros((C,), jnp.float32)
    g2 = jnp.ones((C,), jnp.float32)
    b2 = jnp.zeros((C,), jnp.float32)

    out = basic_block_forward(x_nhwc, w1_oihw, g1, b1, w2_oihw, g2, b2)
    out = jax.block_until_ready(out)

    ref = reference_forward(x_nhwc, w1_oihw, g1, b1, w2_oihw, g2, b2)
    assert out.shape == (N, H, W, C)
    err = float(jnp.max(jnp.abs(out - ref)))
    assert err < 2e-4, f"mismatch vs pure-JAX reference: {err}"

    print("KERNEL_OK")
</pallas_src>

<mosaic_0001>
module attributes {stable_mosaic.version = 11 : i64} {
  func.func @basic_block_kernel(%arg0: memref<32x128xf32, #tpu.memory_space<vmem>>, %arg1: memref<2x32x1xf32, #tpu.memory_space<vmem>>, %arg2: memref<3x128x128xf32, #tpu.memory_space<vmem>>, %arg3: memref<3x128x128xf32, #tpu.memory_space<vmem>>, %arg4: memref<128x128xf32, #tpu.memory_space<vmem>>, %arg5: memref<1x128xf32, #tpu.memory_space<vmem>>, %arg6: memref<1x128xf32, #tpu.memory_space<vmem>>, %arg7: memref<1x128xf32, #tpu.memory_space<vmem>>, %arg8: memref<1x128xf32, #tpu.memory_space<vmem>>, %arg9: memref<32x128xf32, #tpu.memory_space<vmem>>) attributes {dimension_semantics = [], scalar_prefetch = 0 : i64, scratch_operands = 0 : i64, tpu.core_type = #tpu.core_type<tc>} {
    %c0 = arith.constant 0 : index
    %c0_0 = arith.constant 0 : index
    %0 = vector.load %arg0[%c0, %c0_0] : memref<32x128xf32, #tpu.memory_space<vmem>>, vector<32x128xf32>
    %c0_1 = arith.constant 0 : index
    %c0_2 = arith.constant 0 : index
    %c0_3 = arith.constant 0 : index
    %1 = vector.load %arg1[%c0_1, %c0_2, %c0_3] : memref<2x32x1xf32, #tpu.memory_space<vmem>>, vector<1x32x1xf32>
    %2 = vector.shape_cast %1 : vector<1x32x1xf32> to vector<32x1xf32>
    %c1 = arith.constant 1 : index
    %c0_4 = arith.constant 0 : index
    %c0_5 = arith.constant 0 : index
    %3 = vector.load %arg1[%c1, %c0_4, %c0_5] : memref<2x32x1xf32, #tpu.memory_space<vmem>>, vector<1x32x1xf32>
    %4 = vector.shape_cast %3 : vector<1x32x1xf32> to vector<32x1xf32>
    %c0_6 = arith.constant 0 : index
    %c0_7 = arith.constant 0 : index
    %5 = vector.load %arg4[%c0_6, %c0_7] : memref<128x128xf32, #tpu.memory_space<vmem>>, vector<128x128xf32>
    %c1_8 = arith.constant 1 : index
    %c0_9 = arith.constant 0 : index
    %c0_10 = arith.constant 0 : index
    %6 = vector.load %arg2[%c1_8, %c0_9, %c0_10] : memref<3x128x128xf32, #tpu.memory_space<vmem>>, vector<1x128x128xf32>
    %7 = vector.shape_cast %6 : vector<1x128x128xf32> to vector<128x128xf32>
    %cst = arith.constant dense<0.000000e+00> : vector<32x128xf32>
    %8 = tpu.matmul %0, %7, %cst {dimension_numbers = #tpu.dot_dimension_numbers<[1], [0], [0], [1], [0, 0, 1, 1], [], []>} : vector<32x128xf32>, vector<128x128xf32>, vector<32x128xf32> -> vector<32x128xf32>
    %c1_i32 = arith.constant 1 : i32
    %9 = tpu.dynamic_rotate %0 by %c1_i32 dim 0 : vector<32x128xf32>, i32 -> vector<32x128xf32>
    %10 = vector.broadcast %2 : vector<32x1xf32> to vector<32x128xf32>
    %11 = arith.mulf %9, %10 : vector<32x128xf32>
    %c0_11 = arith.constant 0 : index
    %c0_12 = arith.constant 0 : index
    %c0_13 = arith.constant 0 : index
    %12 = vector.load %arg2[%c0_11, %c0_12, %c0_13] : memref<3x128x128xf32, #tpu.memory_space<vmem>>, vector<1x128x128xf32>
    %13 = vector.shape_cast %12 : vector<1x128x128xf32> to vector<128x128xf32>
    %cst_14 = arith.constant dense<0.000000e+00> : vector<32x128xf32>
    %14 = tpu.matmul %11, %13, %cst_14 {dimension_numbers = #tpu.dot_dimension_numbers<[1], [0], [0], [1], [0, 0, 1, 1], [], []>} : vector<32x128xf32>, vector<128x128xf32>, vector<32x128xf32> -> vector<32x128xf32>
    %15 = arith.addf %8, %14 : vector<32x128xf32>
    %c31_i32 = arith.constant 31 : i32
    %16 = tpu.dynamic_rotate %0 by %c31_i32 dim 0 : vector<32x128xf32>, i32 -> vector<32x128xf32>
    %17 = vector.broadcast %4 : vector<32x1xf32> to vector<32x128xf32>
    %18 = arith.mulf %16, %17 : vector<32x128xf32>
    %c2 = arith.constant 2 : index
    %c0_15 = arith.constant 0 : index
    %c0_16 = arith.constant 0 : index
    %19 = vector.load %arg2[%c2, %c0_15, %c0_16] : memref<3x128x128xf32, #tpu.memory_space<vmem>>, vector<1x128x128xf32>
    %20 = vector.shape_cast %19 : vector<1x128x128xf32> to vector<128x128xf32>
    %cst_17 = arith.constant dense<0.000000e+00> : vector<32x128xf32>
    %21 = tpu.matmul %18, %20, %cst_17 {dimension_numbers = #tpu.dot_dimension_numbers<[1], [0], [0], [1], [0, 0, 1, 1], [], []>} : vector<32x128xf32>, vector<128x128xf32>, vector<32x128xf32> -> vector<32x128xf32>
    %22 = arith.addf %15, %21 : vector<32x128xf32>
    %cst_18 = arith.constant dense<0.000000e+00> : vector<128xf32>
    %23 = vector.multi_reduction <add>, %22, %cst_18 [0] : vector<32x128xf32> to vector<128xf32>
    %24 = vector.shape_cast %23 : vector<128xf32> to vector<1x128xf32>
    %25 = arith.mulf %22, %22 : vector<32x128xf32>
    %cst_19 = arith.constant dense<0.000000e+00> : vector<128xf32>
    %26 = vector.multi_reduction <add>, %25, %cst_19 [0] : vector<32x128xf32> to vector<128xf32>
    %27 = vector.shape_cast %26 : vector<128xf32> to vector<1x128xf32>
    %cst_20 = arith.constant dense<0.000000e+00> : vector<1x128xf32>
    %28 = tpu.matmul %24, %5, %cst_20 {dimension_numbers = #tpu.dot_dimension_numbers<[1], [0], [0], [1], [0, 0, 1, 1], [], []>} : vector<1x128xf32>, vector<128x128xf32>, vector<1x128xf32> -> vector<1x128xf32>
    %cst_21 = arith.constant dense<0.000000e+00> : vector<1x128xf32>
    %29 = tpu.matmul %27, %5, %cst_21 {dimension_numbers = #tpu.dot_dimension_numbers<[1], [0], [0], [1], [0, 0, 1, 1], [], []>} : vector<1x128xf32>, vector<128x128xf32>, vector<1x128xf32> -> vector<1x128xf32>
    %30 = arith.mulf %28, %28 : vector<1x128xf32>
    %31 = arith.subf %29, %30 : vector<1x128xf32>
    %c0_22 = arith.constant 0 : index
    %c0_23 = arith.constant 0 : index
    %32 = vector.load %arg5[%c0_22, %c0_23] : memref<1x128xf32, #tpu.memory_space<vmem>>, vector<1x128xf32>
    %cst_24 = arith.constant 9.99999974E-6 : f32
    %33 = vector.broadcast %cst_24 : f32 to vector<1x128xf32>
    %34 = arith.addf %31, %33 : vector<1x128xf32>
    %35 = math.rsqrt %34 : vector<1x128xf32>
    %36 = arith.mulf %32, %35 : vector<1x128xf32>
    %c0_25 = arith.constant 0 : index
    %c0_26 = arith.constant 0 : index
    %37 = vector.load %arg6[%c0_25, %c0_26] : memref<1x128xf32, #tpu.memory_space<vmem>>, vector<1x128xf32>
    %38 = arith.mulf %28, %36 : vector<1x128xf32>
    %39 = arith.subf %37, %38 : vector<1x128xf32>
    %40 = vector.broadcast %36 : vector<1x128xf32> to vector<32x128xf32>
    %41 = arith.mulf %22, %40 : vector<32x128xf32>
    %42 = vector.broadcast %39 : vector<1x128xf32> to vector<32x128xf32>
    %43 = arith.addf %41, %42 : vector<32x128xf32>
    %cst_27 = arith.constant 0.000000e+00 : f32
    %44 = vector.broadcast %cst_27 : f32 to vector<32x128xf32>
    %45 = arith.maximumf %43, %44 : vector<32x128xf32>
    %c1_28 = arith.constant 1 : index
    %c0_29 = arith.constant 0 : index
    %c0_30 = arith.constant 0 : index
    %46 = vector.load %arg3[%c1_28, %c0_29, %c0_30] : memref<3x128x128xf32, #tpu.memory_space<vmem>>, vector<1x128x128xf32>
    %47 = vector.shape_cast %46 : vector<1x128x128xf32> to vector<128x128xf32>
    %cst_31 = arith.constant dense<0.000000e+00> : vector<32x128xf32>
    %48 = tpu.matmul %45, %47, %cst_31 {dimension_numbers = #tpu.dot_dimension_numbers<[1], [0], [0], [1], [0, 0, 1, 1], [], []>} : vector<32x128xf32>, vector<128x128xf32>, vector<32x128xf32> -> vector<32x128xf32>
    %c1_i32_32 = arith.constant 1 : i32
    %49 = tpu.dynamic_rotate %45 by %c1_i32_32 dim 0 : vector<32x128xf32>, i32 -> vector<32x128xf32>
    %50 = vector.broadcast %2 : vector<32x1xf32> to vector<32x128xf32>
    %51 = arith.mulf %49, %50 : vector<32x128xf32>
    %c0_33 = arith.constant 0 : index
    %c0_34 = arith.constant 0 : index
    %c0_35 = arith.constant 0 : index
    %52 = vector.load %arg3[%c0_33, %c0_34, %c0_35] : memref<3x128x128xf32, #tpu.memory_space<vmem>>, vector<1x128x128xf32>
    %53 = vector.shape_cast %52 : vector<1x128x128xf32> to vector<128x128xf32>
    %cst_36 = arith.constant dense<0.000000e+00> : vector<32x128xf32>
    %54 = tpu.matmul %51, %53, %cst_36 {dimension_numbers = #tpu.dot_dimension_numbers<[1], [0], [0], [1], [0, 0, 1, 1], [], []>} : vector<32x128xf32>, vector<128x128xf32>, vector<32x128xf32> -> vector<32x128xf32>
    %55 = arith.addf %48, %54 : vector<32x128xf32>
    %c31_i32_37 = arith.constant 31 : i32
    %56 = tpu.dynamic_rotate %45 by %c31_i32_37 dim 0 : vector<32x128xf32>, i32 -> vector<32x128xf32>
    %57 = vector.broadcast %4 : vector<32x1xf32> to vector<32x128xf32>
    %58 = arith.mulf %56, %57 : vector<32x128xf32>
    %c2_38 = arith.constant 2 : index
    %c0_39 = arith.constant 0 : index
    %c0_40 = arith.constant 0 : index
    %59 = vector.load %arg3[%c2_38, %c0_39, %c0_40] : memref<3x128x128xf32, #tpu.memory_space<vmem>>, vector<1x128x128xf32>
    %60 = vector.shape_cast %59 : vector<1x128x128xf32> to vector<128x128xf32>
    %cst_41 = arith.constant dense<0.000000e+00> : vector<32x128xf32>
    %61 = tpu.matmul %58, %60, %cst_41 {dimension_numbers = #tpu.dot_dimension_numbers<[1], [0], [0], [1], [0, 0, 1, 1], [], []>} : vector<32x128xf32>, vector<128x128xf32>, vector<32x128xf32> -> vector<32x128xf32>
    %62 = arith.addf %55, %61 : vector<32x128xf32>
    %cst_42 = arith.constant dense<0.000000e+00> : vector<128xf32>
    %63 = vector.multi_reduction <add>, %62, %cst_42 [0] : vector<32x128xf32> to vector<128xf32>
    %64 = vector.shape_cast %63 : vector<128xf32> to vector<1x128xf32>
    %65 = arith.mulf %62, %62 : vector<32x128xf32>
    %cst_43 = arith.constant dense<0.000000e+00> : vector<128xf32>
    %66 = vector.multi_reduction <add>, %65, %cst_43 [0] : vector<32x128xf32> to vector<128xf32>
    %67 = vector.shape_cast %66 : vector<128xf32> to vector<1x128xf32>
    %cst_44 = arith.constant dense<0.000000e+00> : vector<1x128xf32>
    %68 = tpu.matmul %64, %5, %cst_44 {dimension_numbers = #tpu.dot_dimension_numbers<[1], [0], [0], [1], [0, 0, 1, 1], [], []>} : vector<1x128xf32>, vector<128x128xf32>, vector<1x128xf32> -> vector<1x128xf32>
    %cst_45 = arith.constant dense<0.000000e+00> : vector<1x128xf32>
    %69 = tpu.matmul %67, %5, %cst_45 {dimension_numbers = #tpu.dot_dimension_numbers<[1], [0], [0], [1], [0, 0, 1, 1], [], []>} : vector<1x128xf32>, vector<128x128xf32>, vector<1x128xf32> -> vector<1x128xf32>
    %70 = arith.mulf %68, %68 : vector<1x128xf32>
    %71 = arith.subf %69, %70 : vector<1x128xf32>
    %c0_46 = arith.constant 0 : index
    %c0_47 = arith.constant 0 : index
    %72 = vector.load %arg7[%c0_46, %c0_47] : memref<1x128xf32, #tpu.memory_space<vmem>>, vector<1x128xf32>
    %cst_48 = arith.constant 9.99999974E-6 : f32
    %73 = vector.broadcast %cst_48 : f32 to vector<1x128xf32>
    %74 = arith.addf %71, %73 : vector<1x128xf32>
    %75 = math.rsqrt %74 : vector<1x128xf32>
    %76 = arith.mulf %72, %75 : vector<1x128xf32>
    %c0_49 = arith.constant 0 : index
    %c0_50 = arith.constant 0 : index
    %77 = vector.load %arg8[%c0_49, %c0_50] : memref<1x128xf32, #tpu.memory_space<vmem>>, vector<1x128xf32>
    %78 = arith.mulf %68, %76 : vector<1x128xf32>
    %79 = arith.subf %77, %78 : vector<1x128xf32>
    %80 = vector.broadcast %76 : vector<1x128xf32> to vector<32x128xf32>
    %81 = arith.mulf %62, %80 : vector<32x128xf32>
    %82 = vector.broadcast %79 : vector<1x128xf32> to vector<32x128xf32>
    %83 = arith.addf %81, %82 : vector<32x128xf32>
    %84 = arith.addf %83, %0 : vector<32x128xf32>
    %cst_51 = arith.constant 0.000000e+00 : f32
    %85 = vector.broadcast %cst_51 : f32 to vector<32x128xf32>
    %86 = arith.maximumf %84, %85 : vector<32x128xf32>
    %c0_52 = arith.constant 0 : index
    %c0_53 = arith.constant 0 : index
    %87 = vector.load %arg9[%c0_52, %c0_53] : memref<32x128xf32, #tpu.memory_space<vmem>>, vector<32x128xf32>
    tpu.vector_store %arg9[%c0_52, %c0_53], %86 {strides = array<i32>} : memref<32x128xf32, #tpu.memory_space<vmem>>, vector<32x128xf32>,
    return
  }
}

</mosaic_0001>

<bundles_post_ra>
// kernel: tpu_custom_call.1
= control target key start
LH: loop header
LB: loop body
LE: loop exit
PB: predicated region body
PF: predicated region fallthrough
CT: control target
= control target key end

     0   :  { %14 = vsyncpa [#allocation3], 0  ;;  %s1204_s0 = inlined_call_operand.hbm [shape: f32[32,128], index: 0, kind: input, shape index: {}, may-alias: {0,9}]   ;;  %s1205_s1 = inlined_call_operand.vmem [shape: f32[2,32,1], index: 1, kind: input, shape index: {}]   ;;  %s1206_s2 = inlined_call_operand.hbm [shape: f32[3,128,128], index: 2, kind: input, shape index: {}]   ;;  %s1207_s3 = inlined_call_operand.hbm [shape: f32[3,128,128], index: 3, kind: input, shape index: {}]   ;;  %s1208_s4 = inlined_call_operand.vmem [shape: f32[128,128], index: 4, kind: input, shape index: {}]   ;;  %s1209_s5 = inlined_call_operand.vmem [shape: f32[1,128], index: 5, kind: input, shape index: {}]   ;;  %s1210_s6 = inlined_call_operand.vmem [shape: f32[1,128], index: 6, kind: input, shape index: {}]   ;;  %s1211_s7 = inlined_call_operand.vmem [shape: f32[1,128], index: 7, kind: input, shape index: {}]   ;;  %s1212_s8 = inlined_call_operand.vmem [shape: f32[1,128], index: 8, kind: input, shape index: {}]   ;;  %s1213_s9 = inlined_call_operand.hbm [shape: f32[32,128], index: 9, kind: output, shape index: {}, may-alias: {0,9}]  }
   0x1   :  { %15 = vsyncpa [#allocation6], 0 }
   0x2   :  { %16 = vsyncpa [#allocation4], 0  ;;  %s36_s11 = sshll.u32 %s1206_s2, 4  ;;  %s827_s12 = smov [#allocation5]   ;;  %s37_s11 = int_to_ptr.hbm [resolvable:$true] %s36_s11 }
   0x3   :  { %s38_s13 = sshll.u32 %s827_s12, 4  ;;  %s21_s16 = sshll.u32 %s1204_s0, 4  ;;  %s39_s13 = int_to_ptr.vmem [resolvable:$true] %s38_s13  ;;  %s22_s16 = int_to_ptr.hbm [resolvable:$true] %s21_s16 }
   0x4   :  { %s828_s17 = smov 128   ;;  %s829_s18 = smov 8  }
   0x5   :  { %44 = dma.hbm_to_vmem [thread:$0]  %s37_s11, 6144, %s39_s13, [#allocation6], %s828_s17, %s828_s17, %s829_s18  }
   0x6   :  { %s830_s19 = smov [#allocation2]   ;;  %s49_s2 = sshll.u32 %s1207_s3, 4  ;;  %s50_s2 = int_to_ptr.hbm [resolvable:$true] %s49_s2 }
   0x7   :  { %s23_s20 = sshll.u32 %s830_s19, 4  ;;  %s831_s0 = smov [#allocation7]   ;;  %s24_s20 = int_to_ptr.vmem [resolvable:$true] %s23_s20 }
   0x8   :  { %29 = dma.hbm_to_vmem [thread:$0]  %s22_s16, 512, %s24_s20, [#allocation3], %s828_s17, %s828_s17, %s829_s18  }
   0x9   :  { %s51_s23 = sshll.u32 %s831_s0, 4  ;;  %s52_s23 = int_to_ptr.vmem [resolvable:$true] %s51_s23 }
   0xa   :  { %57 = dma.hbm_to_vmem [thread:$0]  %s50_s2, 6144, %s52_s23, [#allocation6], %s828_s17, %s828_s17, %s829_s18  }
   0xb   :  { %821 = dma.done.wait [#allocation3], 512  }
   0xc   :  { %822 = vsyncadd [#allocation3], 4294966784 }
   0xd   :  { %823 = dma.done.wait [#allocation6], 12288  }
   0xe   :  { %824 = vsyncadd [#allocation6], 4294955008  ;;  %v832_v0 = vmov 0   ;;  %v708_v1 = vld [vmem:[%s1205_s1 + $0x28] sm:$0xff]  ;;  %v707_v2 = vld [vmem:[%s1205_s1 + $0x20] sm:$0xff]  ;;  %v130_v59 = vlaneseq  ;;  %s693_s11 = sshll.u32 %s1213_s9, 4  ;;  %s694_s11 = int_to_ptr.hbm [resolvable:$true] %s693_s11 }
   0xf   :  { %719 = vset.pattern.permute.xlu1 %v832_v0  ;;  %718 = vset.pattern.permute.xlu0 %v832_v0  ;;  %v709_v3 = vld [vmem:[%s1205_s1 + $0x30] sm:$0xff]  ;;  %v284_v4 = vld [vmem:[#allocation5 + $0x178] sm:$0xff]  ;;  %v282_v6 = vld [vmem:[#allocation5 + $0x168] sm:$0xff] }
  0x10   :  { %720 = vset.pattern.permute.xlu2 %v832_v0  ;;  %251 = vperm.xlu1 %719, %v708_v1   ;;  %v283_v5 = vld [vmem:[#allocation5 + $0x170] sm:$0xff]  ;;  %v176_v7 = vld [vmem:[#allocation5 + $0x78] sm:$0xff]  ;;  %v85_v11 = vld [vmem:[%s1205_s1 + $0x8] sm:$0xff]  ;;  %v932_v60 = vshrl.u32 %v130_v59, 7 }
  0x11   :  { %246 = vperm.xlu0 %718, %v707_v2   ;;  %256 = vperm.xlu2 %720, %v709_v3   ;;  %v125_v8 = vld [vmem:[#allocation5 + $0xf8] sm:$0xff]  ;;  %v175_v9 = vld [vmem:[#allocation5 + $0x70] sm:$0xff]  ;;  %v84_v12 = vld [vmem:[%s1205_s1] sm:$0xff] }
  0x12   :  { %285 = vmatpush.msra.mxu2 %v284_v4  ;;  %177 = vmatpush.msra.mxu0 %v176_v7  ;;  %v124_v10 = vld [vmem:[#allocation5 + $0xf0] sm:$0xff]  ;;  %v281_v13 = vld [vmem:[#allocation5 + $0x160] sm:$0xff]  ;;  %v174_v14 = vld [vmem:[#allocation5 + $0x68] sm:$0xff]  ;;  %vm239_vm0 = vcmp.lt.s32.totalorder %v932_v60, 7  ;;  %vm132_vm1 = vcmp.lt.s32.totalorder %v932_v60, 1 }
  0x13   :  { %206 = vmatpush.msra.mxu1 %v125_v8  ;;  %v86_v15 = vld [vmem:[%s1205_s1 + $0x10] sm:$0xff]  ;;  %v123_v16 = vld [vmem:[#allocation5 + $0xe8] sm:$0xff]  ;;  %v280_v17 = vld [vmem:[#allocation5 + $0x158] sm:$0xff] }
  0x14   :  { %286 = vmatpush.msra.mxu2 %v283_v5  ;;  %178 = vmatpush.msra.mxu0 %v175_v9  ;;  %v173_v18 = vld [vmem:[#allocation5 + $0x60] sm:$0xff]  ;;  %v279_v20 = vld [vmem:[#allocation5 + $0x150] sm:$0xff]  ;;  %v172_v21 = vld [vmem:[#allocation5 + $0x58] sm:$0xff] }
  0x15   :  { %207 = vmatpush.msra.mxu1 %v124_v10  ;;  %v122_v19 = vld [vmem:[#allocation5 + $0xe0] sm:$0xff]  ;;  %v121_v22 = vld [vmem:[#allocation5 + $0xd8] sm:$0xff]  ;;  %v278_v23 = vld [vmem:[#allocation5 + $0x148] sm:$0xff] }
  0x16   :  { %287 = vmatpush.msra.mxu2 %v282_v6  ;;  %179 = vmatpush.msra.mxu0 %v174_v14  ;;  %v171_v24 = vld [vmem:[#allocation5 + $0x50] sm:$0xff]  ;;  %v87_v25 = vld [vmem:[%s1205_s1 + $0x18] sm:$0xff]  ;;  %v277_v27 = vld [vmem:[#allocation5 + $0x140] sm:$0xff] }
  0x17   :  { %208 = vmatpush.msra.mxu1 %v123_v16  ;;  %v710_v26 = vld [vmem:[%s1205_s1 + $0x38] sm:$0xff]  ;;  %v120_v28 = vld [vmem:[#allocation5 + $0xd0] sm:$0xff]  ;;  %v170_v29 = vld [vmem:[#allocation5 + $0x48] sm:$0xff] }
  0x18   :  { %144 = vperm.xlu1 %719, %v85_v11   ;;  %288 = vmatpush.msra.mxu2 %v281_v13  ;;  %v276_v30 = vld [vmem:[#allocation5 + $0x138] sm:$0xff]  ;;  %v119_v31 = vld [vmem:[#allocation5 + $0xc8] sm:$0xff]  ;;  %v169_v32 = vld [vmem:[#allocation5 + $0x40] sm:$0xff] }
  0x19   :  { %139 = vperm.xlu0 %718, %v84_v12   ;;  %149 = vperm.xlu2 %720, %v86_v15   ;;  %v275_v33 = vld [vmem:[#allocation5 + $0x130] sm:$0xff]  ;;  %v118_v34 = vld [vmem:[#allocation5 + $0xc0] sm:$0xff]  ;;  %v168_v35 = vld [vmem:[#allocation5 + $0x38] sm:$0xff] }
  0x1a   :  { %289 = vmatpush.msra.mxu2 %v280_v17  ;;  %180 = vmatpush.msra.mxu0 %v173_v18  ;;  %v274_v36 = vld [vmem:[#allocation5 + $0x128] sm:$0xff]  ;;  %v117_v37 = vld [vmem:[#allocation5 + $0xb8] sm:$0xff]  ;;  %v167_v38 = vld [vmem:[#allocation5 + $0x30] sm:$0xff] }
  0x1b   :  { %209 = vmatpush.msra.mxu1 %v122_v19  ;;  %v273_v39 = vld [vmem:[#allocation5 + $0x120] sm:$0xff]  ;;  %v116_v40 = vld [vmem:[#allocation5 + $0xb0] sm:$0xff]  ;;  %v166_v41 = vld [vmem:[#allocation5 + $0x28] sm:$0xff] }
  0x1c   :  { %290 = vmatpush.msra.mxu2 %v279_v20  ;;  %181 = vmatpush.msra.mxu0 %v172_v21  ;;  %v272_v42 = vld [vmem:[#allocation5 + $0x118] sm:$0xff]  ;;  %v115_v43 = vld [vmem:[#allocation5 + $0xa8] sm:$0xff]  ;;  %v271_v44 = vld [vmem:[#allocation5 + $0x110] sm:$0xff] }
  0x1d   :  { %210 = vmatpush.msra.mxu1 %v121_v22  ;;  %v270_v45 = vld [vmem:[#allocation5 + $0x108] sm:$0xff]  ;;  %v165_v46 = vld [vmem:[#allocation5 + $0x20] sm:$0xff]  ;;  %v164_v49 = vld [vmem:[#allocation5 + $0x18] sm:$0xff] }
  0x1e   :  { %291 = vmatpush.msra.mxu2 %v278_v23  ;;  %182 = vmatpush.msra.mxu0 %v171_v24  ;;  %v114_v47 = vld [vmem:[#allocation5 + $0xa0] sm:$0xff]  ;;  %v113_v50 = vld [vmem:[#allocation5 + $0x98] sm:$0xff]  ;;  %v163_v51 = vld [vmem:[#allocation5 + $0x10] sm:$0xff] }
  0x1f   :  { %211 = vmatpush.msra.mxu1 %v120_v28  ;;  %v269_v48 = vld [vmem:[#allocation5 + $0x100] sm:$0xff]  ;;  %v112_v52 = vld [vmem:[#allocation5 + $0x90] sm:$0xff]  ;;  %v162_v53 = vld [vmem:[#allocation5 + $0x8] sm:$0xff] }
  0x20   :  { %154 = vperm.xlu1 %719, %v87_v25   ;;  %292 = vmatpush.msra.mxu2 %v277_v27  ;;  %v111_v54 = vld [vmem:[#allocation5 + $0x88] sm:$0xff]  ;;  %v161_v55 = vld [vmem:[#allocation5] sm:$0xff]  ;;  %v936_v63 = vld [vmem:[#allocation2 + $0x10] sm:$0xff] }
  0x21   :  { %261 = vperm.xlu0 %718, %v710_v26   ;;  %183 = vmatpush.msra.mxu0 %v170_v29  ;;  %v110_v56 = vld [vmem:[#allocation5 + $0x80] sm:$0xff]  ;;  %v929_v58 = vld [vmem:[#allocation2 + $0x8] sm:$0xff]  ;;  %v942_v1 = vld [vmem:[#allocation2 + $0x18] sm:$0xff]  ;;  %v237_v3 = vrot.slane %v936_v63, 1  ;;  %v128_v21 = vrot.slane %v936_v63, 7 }
  0x22   :  { %293 = vmatpush.msra.mxu2 %v276_v30  ;;  %212 = vmatpush.msra.mxu1 %v119_v31  ;;  %v926_v57 = vld [vmem:[#allocation2] sm:$0xff]  ;;  %v236_v62 = vrot.slane %v929_v58, 1  ;;  %v129_v6 = vrot.slane %v942_v1, 7  ;;  %v238_v12 = vrot.slane %v942_v1, 1  ;;  %v127_v14 = vrot.slane %v929_v58, 7  ;;  %v993_v31 = vld [vmem:[%s1208_s4 + $0x78] sm:$0xff] }
  0x23   :  { %184 = vmatpush.msra.mxu0 %v169_v32  ;;  %v235_v61 = vrot.slane %v926_v57, 1  ;;  %v126_v5 = vrot.slane %v926_v57, 7  ;;  %340 = vmatpush.msra.mxu3 %v993_v31  ;;  %v1000_v32 = vld [vmem:[%s1208_s4 + $0x70] sm:$0xff] }
  0x24   :  { %294 = vmatpush.msra.mxu2 %v275_v33  ;;  %213 = vmatpush.msra.mxu1 %v118_v34  ;;  %v241_v8 = vsel %vm239_vm0, %v236_v62, %v237_v3  ;;  %v240_v16 = vsel %vm239_vm0, %v237_v3, %v238_v12  ;;  %v134_v23 = vsel %vm132_vm1, %v127_v14, %v128_v21  ;;  %v1007_v33 = vld [vmem:[%s1208_s4 + $0x68] sm:$0xff]  ;;  %v1014_v34 = vld [vmem:[%s1208_s4 + $0x60] sm:$0xff] }
  0x25   :  { %185 = vmatpush.msra.mxu0 %v168_v35  ;;  %v242_v0 = vsel %vm239_vm0, %v235_v61, %v236_v62  ;;  %v136_v9 = vsel %vm132_vm1, %v129_v6, %v126_v5  ;;  %v135_v18 = vsel %vm132_vm1, %v126_v5, %v127_v14  ;;  %v243_v25 = vsel %vm239_vm0, %v238_v12, %v235_v61  ;;  %v1021_v35 = vld [vmem:[%s1208_s4 + $0x58] sm:$0xff] }
  0x26   :  { %295 = vmatpush.msra.mxu2 %v274_v36  ;;  %214 = vmatpush.msra.mxu1 %v117_v37  ;;  %v133_v29 = vsel %vm132_vm1, %v128_v21, %v129_v6  ;;  %v1028_v36 = vld [vmem:[%s1208_s4 + $0x50] sm:$0xff]  ;;  %v1035_v37 = vld [vmem:[%s1208_s4 + $0x48] sm:$0xff] }
  0x27   :  { %186 = vmatpush.msra.mxu0 %v167_v38  ;;  %341 = vmatpush.msra.mxu3 %v1000_v32 }
  0x28   :  { %296 = vmatpush.msra.mxu2 %v273_v39  ;;  %215 = vmatpush.msra.mxu1 %v116_v40  ;;  %v1042_v39 = vld [vmem:[%s1208_s4 + $0x40] sm:$0xff]  ;;  %v1049_v40 = vld [vmem:[%s1208_s4 + $0x38] sm:$0xff] }
  0x29   :  { %187 = vmatpush.msra.mxu0 %v166_v41  ;;  %342 = vmatpush.msra.mxu3 %v1007_v33  ;;  %v1056_v41 = vld [vmem:[%s1208_s4 + $0x30] sm:$0xff] }
  0x2a   :  { %297 = vmatpush.msra.mxu2 %v272_v42  ;;  %216 = vmatpush.msra.mxu1 %v115_v43  ;;  %v1063_v43 = vld [vmem:[%s1208_s4 + $0x28] sm:$0xff] }
  0x2b   :  { %188 = vmatpush.msra.mxu0 %v165_v46  ;;  %343 = vmatpush.msra.mxu3 %v1014_v34  ;;  %v1075_v46 = vld [vmem:[%s1208_s4 + $0x18] sm:$0xff] }
  0x2c   :  { %298 = vmatpush.msra.mxu2 %v271_v44  ;;  %217 = vmatpush.msra.mxu1 %v114_v47  ;;  %v1068_v44 = vld [vmem:[%s1208_s4 + $0x20] sm:$0xff] }
  0x2d   :  { %189 = vmatpush.msra.mxu0 %v164_v49  ;;  %344 = vmatpush.msra.mxu3 %v1021_v35  ;;  %v1089_v49 = vld [vmem:[%s1208_s4 + $0x8] sm:$0xff] }
  0x2e   :  { %299 = vmatpush.msra.mxu2 %v270_v45  ;;  %218 = vmatpush.msra.mxu1 %v113_v50 }
  0x2f   :  { %190 = vmatpush.msra.mxu0 %v163_v51  ;;  %345 = vmatpush.msra.mxu3 %v1028_v36  ;;  %v1096_v51 = vld [vmem:[%s1208_s4] sm:$0xff] }
  0x30   :  { %300 = vmatpush.msra.mxu2 %v269_v48  ;;  %219 = vmatpush.msra.mxu1 %v112_v52  ;;  %v1082_v48 = vld [vmem:[%s1208_s4 + $0x10] sm:$0xff] }
  0x31   :  { %191 = vmatpush.msra.mxu0 %v162_v53  ;;  %346 = vmatpush.msra.mxu3 %v1035_v37 }
  0x32   :  { %220 = vmatpush.msra.mxu1 %v111_v54 }
  0x33   :  { %192 = vmatpush.msra.mxu0 %v161_v55  ;;  %347 = vmatpush.msra.mxu3 %v1042_v39 }
  0x34   :  { %221 = vmatpush.msra.mxu1 %v110_v56 }
  0x35   :  { %222 = vmatmul.f32.vlgmr.msra.gmra.mxu1 %v926_v57  ;;  %360 = vmatpush.msrb.mxu0 %v993_v31 }
  0x36   :  { %348 = vmatpush.msra.mxu3 %v1049_v40 }
  0x37   :  { %361 = vmatpush.msrb.mxu0 %v1000_v32 }
  0x38   :  { %349 = vmatpush.msra.mxu3 %v1056_v41 }
  0x39   :  { %362 = vmatpush.msrb.mxu0 %v1007_v33 }
  0x3a   :  { %350 = vmatpush.msra.mxu3 %v1063_v43 }
  0x3b   :  { %363 = vmatpush.msrb.mxu0 %v1014_v34 }
  0x3c   :  { %351 = vmatpush.msra.mxu3 %v1068_v44 }
  0x3d   :  { %225 = vmatmul.f32.gmra.mxu1 %v929_v58  ;;  %364 = vmatpush.msrb.mxu0 %v1021_v35 }
  0x3e   :  { %352 = vmatpush.msra.mxu3 %v1075_v46 }
  0x3f   :  { %365 = vmatpush.msrb.mxu0 %v1028_v36 }
  0x40   :  { %353 = vmatpush.msra.mxu3 %v1082_v48 }
  0x41   :  { %366 = vmatpush.msrb.mxu0 %v1035_v37 }
  0x42   :  { %354 = vmatpush.msra.mxu3 %v1089_v49 }
  0x43   :  { %367 = vmatpush.msrb.mxu0 %v1042_v39 }
  0x44   :  { %355 = vmatpush.msra.mxu3 %v1096_v51 }
  0x45   :  { %228 = vmatmul.f32.gmra.mxu1 %v936_v63  ;;  %368 = vmatpush.msrb.mxu0 %v1049_v40 }
  0x47   :  { %369 = vmatpush.msrb.mxu0 %v1056_v41 }
  0x49   :  { %370 = vmatpush.msrb.mxu0 %v1063_v43 }
  0x4b   :  { %371 = vmatpush.msrb.mxu0 %v1068_v44 }
  0x4d   :  { %231 = vmatmul.f32.gmra.mxu1 %v942_v1  ;;  %372 = vmatpush.msrb.mxu0 %v1075_v46 }
  0x4f   :  { %373 = vmatpush.msrb.mxu0 %v1082_v48 }
  0x51   :  { %374 = vmatpush.msrb.mxu0 %v1089_v49 }
  0x53   :  { %375 = vmatpush.msrb.mxu0 %v1096_v51 }
  0x6b   :  { %v964_v15 = vpop.permute.xlu2 %256 }
  0x6c   :  { %v266_v19 = vmul.f32 %v964_v15, %v240_v16 }
  0x73   :  { %v975_v22 = vpop.permute.xlu2 %149 }
  0x74   :  { %v159_v26 = vmul.f32 %v975_v22, %v134_v23 }
  0x82   :  { %v952_v7 = vpop.permute.xlu1 %251 }
  0x83   :  { %v944_v2 = vpop.permute.xlu0 %246  ;;  %v265_v10 = vmul.f32 %v952_v7, %v241_v8 }
  0x84   :  { %v264_v4 = vmul.f32 %v944_v2, %v242_v0 }
  0x86   :  { %301 = vmatmul.f32.vlgmr.msra.gmra.mxu2 %v264_v4 }
  0x8a   :  { %v968_v17 = vpop.permute.xlu1 %144 }
  0x8b   :  { %v959_v11 = vpop.permute.xlu0 %139  ;;  %v158_v20 = vmul.f32 %v968_v17, %v135_v18 }
  0x8c   :  { %v157_v13 = vmul.f32 %v959_v11, %v136_v9 }
  0x8e   :  { %193 = vmatmul.f32.vlgmr.msra.gmra.mxu0 %v157_v13  ;;  %304 = vmatmul.f32.gmra.mxu2 %v265_v10 }
  0x8f   :  { %603 = vmatpush.msra.mxu0 %v993_v31 }
  0x91   :  { %604 = vmatpush.msra.mxu0 %v1000_v32 }
  0x92   :  { %v985_v28 = vpop.permute.xlu1 %154 }
  0x93   :  { %v979_v24 = vpop.permute.xlu0 %261  ;;  %v160_v30 = vmul.f32 %v985_v28, %v133_v29  ;;  %605 = vmatpush.msra.mxu0 %v1007_v33 }
  0x94   :  { %v267_v27 = vmul.f32 %v979_v24, %v243_v25 }
  0x95   :  { %606 = vmatpush.msra.mxu0 %v1014_v34 }
  0x96   :  { %196 = vmatmul.f32.gmra.mxu0 %v158_v20  ;;  %307 = vmatmul.f32.gmra.mxu2 %v266_v19 }
  0x97   :  { %607 = vmatpush.msra.mxu0 %v1021_v35 }
  0x99   :  { %608 = vmatpush.msra.mxu0 %v1028_v36 }
  0x9b   :  { %609 = vmatpush.msra.mxu0 %v1035_v37 }
  0x9d   :  { %610 = vmatpush.msra.mxu0 %v1042_v39 }
  0x9e   :  { %199 = vmatmul.f32.gmra.mxu0 %v159_v26  ;;  %310 = vmatmul.f32.gmra.mxu2 %v267_v27 }
  0x9f   :  { %611 = vmatpush.msra.mxu0 %v1049_v40 }
  0xa1   :  { %612 = vmatpush.msra.mxu0 %v1056_v41 }
  0xa3   :  { %613 = vmatpush.msra.mxu0 %v1063_v43 }
  0xa5   :  { %614 = vmatpush.msra.mxu0 %v1068_v44 }
  0xa6   :  { %202 = vmatmul.f32.gmra.mxu0 %v160_v30 }
  0xa7   :  { %615 = vmatpush.msra.mxu0 %v1075_v46 }
  0xa9   :  { %616 = vmatpush.msra.mxu0 %v1082_v48 }
  0xab   :  { %617 = vmatpush.msra.mxu0 %v1089_v49 }
  0xad   :  { %618 = vmatpush.msra.mxu0 %v1096_v51 }
  0xb2   :  { %v223_v38 = vpop.f32.mrf.mxu1 }
  0xba   :  { %v226_v47 = vpop.f32.mrf.mxu1 }
  0xc2   :  { %v229_v53 = vpop.f32.mrf.mxu1 }
  0xca   :  { %v232_v4 = vpop.f32.mrf.mxu1 }
 0x109   :  { %v302_v42 = vpop.f32.mrf.mxu2 }
 0x10b   :  { %v194_v45 = vpop.f32.mrf.mxu0 }
 0x10c   :  { %v224_v59 = vadd.f32 %v223_v38, %v194_v45 }
 0x10e   :  { %v1109_v0 = vadd.f32 %v302_v42, %v224_v59  ;;  %v460_v59 = vld [vmem:[#allocation7 + $0x78] sm:$0xff] }
 0x10f   :  { %461 = vmatpush.msrb.mxu1 %v460_v59  ;;  %v537_v59 = vld [vmem:[#allocation7 + $0x128] sm:$0xff] }
 0x110   :  { %v327_v8 = vmul.f32 %v1109_v0, %v1109_v0 }
 0x111   :  { %v305_v50 = vpop.f32.mrf.mxu2 }
 0x113   :  { %v197_v52 = vpop.f32.mrf.mxu0 }
 0x114   :  { %v227_v54 = vadd.f32 %v226_v47, %v197_v52 }
 0x116   :  { %v1106_v62 = vadd.f32 %v305_v50, %v227_v54  ;;  %v432_v54 = vld [vmem:[#allocation7 + $0xf8] sm:$0xff] }
 0x117   :  { %490 = vmatpush.msrb.mxu2 %v432_v54  ;;  %v538_v54 = vld [vmem:[#allocation7 + $0x130] sm:$0xff] }
 0x118   :  { %v328_v5 = vmul.f32 %v1106_v62, %v1106_v62  ;;  %v318_v9 = vadd.f32 %v1106_v62, %v1109_v0 }
 0x119   :  { %v308_v55 = vpop.f32.mrf.mxu2 }
 0x11a   :  { %v331_v14 = vadd.f32 %v328_v5, %v327_v8  ;;  %v459_v5 = vld [vmem:[#allocation7 + $0x70] sm:$0xff]  ;;  %v428_v8 = vld [vmem:[#allocation7 + $0xd8] sm:$0xff] }
 0x11b   :  { %v200_v56 = vpop.f32.mrf.mxu0  ;;  %462 = vmatpush.msrb.mxu1 %v459_v5  ;;  %v449_v5 = vld [vmem:[#allocation7 + $0x20] sm:$0xff] }
 0x11c   :  { %v230_v61 = vadd.f32 %v229_v53, %v200_v56  ;;  %v430_v56 = vld [vmem:[#allocation7 + $0xe8] sm:$0xff] }
 0x11e   :  { %v1111_v3 = vadd.f32 %v308_v55, %v230_v61  ;;  %v431_v55 = vld [vmem:[#allocation7 + $0xf0] sm:$0xff]  ;;  %v547_v61 = vld [vmem:[#allocation7 + $0x178] sm:$0xff] }
 0x11f   :  { %491 = vmatpush.msrb.mxu2 %v431_v55  ;;  %548 = vmatpush.msrb.mxu3 %v547_v61  ;;  %v420_v55 = vld [vmem:[#allocation7 + $0x98] sm:$0xff]  ;;  %v419_v61 = vld [vmem:[#allocation7 + $0x90] sm:$0xff] }
 0x120   :  { %v329_v10 = vmul.f32 %v1111_v3, %v1111_v3  ;;  %v319_v16 = vadd.f32 %v318_v9, %v1111_v3  ;;  %v458_v9 = vld [vmem:[#allocation7 + $0x68] sm:$0xff] }
 0x121   :  { %v311_v13 = vpop.f32.mrf.mxu2  ;;  %492 = vmatpush.msrb.mxu2 %v430_v56  ;;  %463 = vmatpush.msrb.mxu1 %v458_v9  ;;  %v450_v56 = vld [vmem:[#allocation7 + $0x28] sm:$0xff] }
 0x122   :  { %v332_v19 = vadd.f32 %v331_v14, %v329_v10  ;;  %v545_v10 = vld [vmem:[#allocation7 + $0x168] sm:$0xff]  ;;  %v544_v14 = vld [vmem:[#allocation7 + $0x160] sm:$0xff] }
 0x123   :  { %v203_v6 = vpop.f32.mrf.mxu0  ;;  %v418_v9 = vld [vmem:[#allocation7 + $0x88] sm:$0xff] }
 0x124   :  { %v233_v12 = vadd.f32 %v232_v4, %v203_v6  ;;  %v429_v4 = vld [vmem:[#allocation7 + $0xe0] sm:$0xff]  ;;  %v546_v6 = vld [vmem:[#allocation7 + $0x170] sm:$0xff] }
 0x125   :  { %493 = vmatpush.msrb.mxu2 %v429_v4  ;;  %549 = vmatpush.msrb.mxu3 %v546_v6  ;;  %v536_v6 = vld [vmem:[#allocation7 + $0x120] sm:$0xff] }
 0x126   :  { %v1125_v18 = vadd.f32 %v311_v13, %v233_v12  ;;  %v427_v12 = vld [vmem:[#allocation7 + $0xd0] sm:$0xff]  ;;  %v457_v13 = vld [vmem:[#allocation7 + $0x60] sm:$0xff] }
 0x127   :  { %494 = vmatpush.msrb.mxu2 %v428_v8  ;;  %550 = vmatpush.msrb.mxu3 %v545_v10 }
 0x128   :  { %v320_v20 = vadd.f32 %v319_v16, %v1125_v18  ;;  %v330_v21 = vmul.f32 %v1125_v18, %v1125_v18  ;;  %464 = vmatpush.msrb.mxu1 %v457_v13  ;;  %v426_v16 = vld [vmem:[#allocation7 + $0xc8] sm:$0xff]  ;;  %v535_v13 = vld [vmem:[#allocation7 + $0x118] sm:$0xff] }
 0x129   :  { %495 = vmatpush.msrb.mxu2 %v427_v12  ;;  %551 = vmatpush.msrb.mxu3 %v544_v14  ;;  %v448_v12 = vld [vmem:[#allocation7 + $0x18] sm:$0xff] }
 0x12a   :  { %v333_v23 = vadd.f32 %v332_v19, %v330_v21  ;;  %v321_v25 = vrot.slane %v320_v20, 4  ;;  %v456_v19 = vld [vmem:[#allocation7 + $0x58] sm:$0xff]  ;;  %v425_v21 = vld [vmem:[#allocation7 + $0xc0] sm:$0xff] }
 0x12b   :  { %496 = vmatpush.msrb.mxu2 %v426_v16  ;;  %465 = vmatpush.msrb.mxu1 %v456_v19  ;;  %v417_v16 = vld [vmem:[#allocation7 + $0x80] sm:$0xff]  ;;  %v447_v19 = vld [vmem:[#allocation7 + $0x10] sm:$0xff] }
 0x12c   :  { %v322_v26 = vadd.f32 %v321_v25, %v320_v20  ;;  %v334_v27 = vrot.slane %v333_v23, 4  ;;  %v543_v20 = vld [vmem:[#allocation7 + $0x158] sm:$0xff]  ;;  %v542_v25 = vld [vmem:[#allocation7 + $0x150] sm:$0xff] }
 0x12d   :  { %552 = vmatpush.msrb.mxu3 %v543_v20  ;;  %497 = vmatpush.msrb.mxu2 %v425_v21  ;;  %v534_v21 = vld [vmem:[#allocation7 + $0x110] sm:$0xff] }
 0x12e   :  { %v323_v29 = vrot.slane %v322_v26, 2  ;;  %v335_v30 = vadd.f32 %v334_v27, %v333_v23  ;;  %v455_v23 = vld [vmem:[#allocation7 + $0x50] sm:$0xff]  ;;  %v454_v27 = vld [vmem:[#allocation7 + $0x48] sm:$0xff] }
 0x12f   :  { %466 = vmatpush.msrb.mxu1 %v455_v23  ;;  %553 = vmatpush.msrb.mxu3 %v542_v25  ;;  %v446_v23 = vld [vmem:[#allocation7 + $0x8] sm:$0xff] }
 0x130   :  { %v324_v38 = vadd.f32 %v323_v29, %v322_v26  ;;  %v336_v42 = vrot.slane %v335_v30, 2  ;;  %v424_v26 = vld [vmem:[#allocation7 + $0xb8] sm:$0xff]  ;;  %v541_v29 = vld [vmem:[#allocation7 + $0x148] sm:$0xff] }
 0x131   :  { %498 = vmatpush.msrb.mxu2 %v424_v26  ;;  %467 = vmatpush.msrb.mxu1 %v454_v27  ;;  %v533_v25 = vld [vmem:[#allocation7 + $0x108] sm:$0xff]  ;;  %v445_v26 = vld [vmem:[#allocation7] sm:$0xff] }
 0x132   :  { %v325_v45 = vrot.slane %v324_v38, 1  ;;  %v337_v47 = vadd.f32 %v336_v42, %v335_v30  ;;  %554 = vmatpush.msrb.mxu3 %v541_v29  ;;  %v423_v30 = vld [vmem:[#allocation7 + $0xb0] sm:$0xff]  ;;  %v540_v42 = vld [vmem:[#allocation7 + $0x140] sm:$0xff] }
 0x133   :  { %499 = vmatpush.msrb.mxu2 %v423_v30  ;;  %v532_v27 = vld [vmem:[#allocation7 + $0x100] sm:$0xff] }
 0x134   :  { %v326_v50 = vadd.f32 %v325_v45, %v324_v38  ;;  %v338_v52 = vrot.slane %v337_v47, 1  ;;  %v453_v38 = vld [vmem:[#allocation7 + $0x40] sm:$0xff]  ;;  %555 = vmatpush.msrb.mxu3 %v540_v42  ;;  %v422_v45 = vld [vmem:[#allocation7 + $0xa8] sm:$0xff] }
 0x135   :  { %468 = vmatpush.msrb.mxu1 %v453_v38  ;;  %500 = vmatpush.msrb.mxu2 %v422_v45 }
 0x136   :  { %356 = vmatmul.f32.vlgmr.msra.gmra.mxu3 %v326_v50  ;;  %v339_v53 = vadd.f32 %v338_v52, %v337_v47  ;;  %v452_v47 = vld [vmem:[#allocation7 + $0x38] sm:$0xff]  ;;  %v421_v52 = vld [vmem:[#allocation7 + $0xa0] sm:$0xff] }
 0x137   :  { %v539_v50 = vld [vmem:[#allocation7 + $0x138] sm:$0xff]  ;;  %469 = vmatpush.msrb.mxu1 %v452_v47  ;;  %501 = vmatpush.msrb.mxu2 %v421_v52 }
 0x138   :  { %376 = vmatmul.f32.vlgmr.msrb.gmra.mxu0 %v339_v53  ;;  %556 = vmatpush.msrb.mxu3 %v539_v50  ;;  %v451_v53 = vld [vmem:[#allocation7 + $0x30] sm:$0xff] }
 0x139   :  { %470 = vmatpush.msrb.mxu1 %v451_v53  ;;  %502 = vmatpush.msrb.mxu2 %v420_v55 }
 0x13a   :  { %557 = vmatpush.msrb.mxu3 %v538_v54 }
 0x13b   :  { %471 = vmatpush.msrb.mxu1 %v450_v56  ;;  %503 = vmatpush.msrb.mxu2 %v419_v61 }
 0x13c   :  { %558 = vmatpush.msrb.mxu3 %v537_v59 }
 0x13d   :  { %472 = vmatpush.msrb.mxu1 %v449_v5  ;;  %504 = vmatpush.msrb.mxu2 %v418_v9 }
 0x13e   :  { %559 = vmatpush.msrb.mxu3 %v536_v6 }
 0x13f   :  { %473 = vmatpush.msrb.mxu1 %v448_v12  ;;  %505 = vmatpush.msrb.mxu2 %v417_v16 }
 0x140   :  { %560 = vmatpush.msrb.mxu3 %v535_v13 }
 0x141   :  { %474 = vmatpush.msrb.mxu1 %v447_v19 }
 0x142   :  { %561 = vmatpush.msrb.mxu3 %v534_v21 }
 0x143   :  { %475 = vmatpush.msrb.mxu1 %v446_v23 }
 0x144   :  { %562 = vmatpush.msrb.mxu3 %v533_v25 }
 0x145   :  { %476 = vmatpush.msrb.mxu1 %v445_v26 }
 0x146   :  { %563 = vmatpush.msrb.mxu3 %v532_v27 }
 0x147   :  { %623 = vmatpush.msra.mxu1 %v993_v31  ;;  %v382_v31 = vld [vmem:[%s1209_s5] sm:$0x1] }
 0x149   :  { %624 = vmatpush.msra.mxu1 %v1000_v32 }
 0x14b   :  { %625 = vmatpush.msra.mxu1 %v1007_v33 }
 0x14d   :  { %626 = vmatpush.msra.mxu1 %v1014_v34  ;;  %v395_v34 = vld [vmem:[%s1210_s6] sm:$0x1] }
 0x14f   :  { %627 = vmatpush.msra.mxu1 %v1021_v35 }
 0x151   :  { %628 = vmatpush.msra.mxu1 %v1028_v36 }
 0x153   :  { %629 = vmatpush.msra.mxu1 %v1035_v37 }
 0x155   :  { %630 = vmatpush.msra.mxu1 %v1042_v39 }
 0x157   :  { %631 = vmatpush.msra.mxu1 %v1049_v40 }
 0x159   :  { %632 = vmatpush.msra.mxu1 %v1056_v41 }
 0x15b   :  { %633 = vmatpush.msra.mxu1 %v1063_v43 }
 0x15d   :  { %634 = vmatpush.msra.mxu1 %v1068_v44 }
 0x15f   :  { %635 = vmatpush.msra.mxu1 %v1075_v46 }
 0x161   :  { %636 = vmatpush.msra.mxu1 %v1082_v48 }
 0x163   :  { %637 = vmatpush.msra.mxu1 %v1089_v49 }
 0x165   :  { %638 = vmatpush.msra.mxu1 %v1096_v51 }
 0x1b5   :  { %v377_v10 = vpop.f32.mrf.mxu0 }
 0x1b9   :  { %v357_v4 = vpop.f32.mrf.mxu3 }
 0x1ba   :  { %v380_v8 = vmul.f32 %v357_v4, %v357_v4 }
 0x1bc   :  { %v381_v14 = vsub.f32 %v377_v10, %v380_v8 }
 0x1be   :  { %v383_v20 = vadd.f32 1e-05, %v381_v14 }
 0x1c0   :  { %721 = vrsqrt.f32 %v383_v20  ;;  %vm390_vm3 = vweird.f32 %v383_v20 }
 0x1c6   :  { %v722_v29 = vpop.eup %721 }
 0x1c7   :  { %v385_v30 = vmul.f32 %v722_v29, %v383_v20  ;;  %vm391_vm2 = vweird.f32 %v722_v29 }
 0x1c8   :  { %vm392_vm4 = vmor %vm390_vm3, %vm391_vm2 }
 0x1c9   :  { %v386_v38 = vmul.f32 %v722_v29, %v385_v30 }
 0x1cb   :  { %v387_v42 = vmul.f32 0.5, %v386_v38 }
 0x1cd   :  { %v388_v45 = vsub.f32 1.5, %v387_v42 }
 0x1cf   :  { %v389_v47 = vmul.f32 %v722_v29, %v388_v45 }
 0x1d1   :  { %v393_v32 = vsel %vm392_vm4, %v722_v29, %v389_v47 }
 0x1d2   :  { %v394_v33 = vmul.f32 %v393_v32, %v382_v31 }
 0x1d4   :  { %v396_v35 = vmul.f32 %v394_v33, %v357_v4  ;;  %v399_v36 = vperm.slane %v394_v33, 0 }
 0x1d6   :  { %v397_v50 = vsub.f32 %v395_v34, %v396_v35  ;;  %v402_v52 = vmul.f32 %v399_v36, %v1106_v62  ;;  %v403_v37 = vmul.f32 %v399_v36, %v1111_v3  ;;  %v404_v39 = vmul.f32 %v399_v36, %v1125_v18 }
 0x1d7   :  { %v401_v54 = vmul.f32 %v399_v36, %v1109_v0 }
 0x1d8   :  { %v406_v53 = vperm.slane %v397_v50, 0 }
 0x1da   :  { %v409_v55 = vadd.f32 %v406_v53, %v402_v52  ;;  %v411_v40 = vadd.f32 %v406_v53, %v404_v39  ;;  %v408_v56 = vadd.f32 %v406_v53, %v401_v54  ;;  %v410_v59 = vadd.f32 %v406_v53, %v403_v37 }
 0x1dc   :  { %v413_v41 = vmax.f32 %v409_v55, 0.0  ;;  %v415_v61 = vmax.f32 %v411_v40, 0.0  ;;  %v412_v62 = vmax.f32 %v408_v56, 0.0  ;;  %v414_v4 = vmax.f32 %v410_v59, 0.0 }
 0x1de   :  { %v433_v43 = vrot.slane %v412_v62, 7  ;;  %506 = vmatmul.f32.vlgmr.msrb.gmra.mxu2 %v412_v62  ;;  %v519_v3 = vrot.slane %v412_v62, 1  ;;  %v436_v18 = vrot.slane %v415_v61, 7  ;;  %v520_v5 = vrot.slane %v413_v41, 1 }
 0x1df   :  { %v434_v48 = vrot.slane %v413_v41, 7  ;;  %v521_v8 = vrot.slane %v414_v4, 1  ;;  %v522_v13 = vrot.slane %v415_v61, 1 }
 0x1e0   :  { %v440_v44 = vsel %vm132_vm1, %v436_v18, %v433_v43  ;;  %v525_v0 = vsel %vm239_vm0, %v519_v3, %v520_v5 }
 0x1e1   :  { %v441_v46 = vmul.f32 %v440_v44, %v959_v11  ;;  %v527_v6 = vmul.f32 %v525_v0, %v944_v2  ;;  %v439_v49 = vsel %vm132_vm1, %v433_v43, %v434_v48  ;;  %v524_v9 = vsel %vm239_vm0, %v520_v5, %v521_v8 }
 0x1e2   :  { %v442_v10 = vmul.f32 %v439_v49, %v968_v17  ;;  %v528_v12 = vmul.f32 %v524_v9, %v952_v7  ;;  %v435_v11 = vrot.slane %v414_v4, 7  ;;  %v523_v51 = vsel %vm239_vm0, %v521_v8, %v522_v13 }
 0x1e3   :  { %477 = vmatmul.f32.vlgmr.msrb.gmra.mxu1 %v441_v46  ;;  %564 = vmatmul.f32.vlgmr.msrb.gmra.mxu3 %v527_v6  ;;  %v529_v16 = vmul.f32 %v523_v51, %v964_v15  ;;  %v526_v17 = vsel %vm239_vm0, %v522_v13, %v519_v3 }
 0x1e4   :  { %v438_v2 = vsel %vm132_vm1, %v434_v48, %v435_v11  ;;  %v437_v7 = vsel %vm132_vm1, %v435_v11, %v436_v18  ;;  %v530_v20 = vmul.f32 %v526_v17, %v979_v24 }
 0x1e5   :  { %v443_v14 = vmul.f32 %v438_v2, %v975_v22  ;;  %v444_v19 = vmul.f32 %v437_v7, %v985_v28  ;;  %v645_v2 = vld [vmem:[%s1211_s7] sm:$0x1]  ;;  %s833_s7 = smov [#allocation8]  }
 0x1e6   :  { %509 = vmatmul.f32.gmra.mxu2 %v413_v41  ;;  %v658_v7 = vld [vmem:[%s1212_s8] sm:$0x1]  ;;  %s691_s8 = sshll.u32 %s833_s7, 4  ;;  %s692_s8 = int_to_ptr.vmem [resolvable:$true] %s691_s8 }
 0x1eb   :  { %480 = vmatmul.f32.gmra.mxu1 %v442_v10  ;;  %567 = vmatmul.f32.gmra.mxu3 %v528_v12 }
 0x1ee   :  { %512 = vmatmul.f32.gmra.mxu2 %v414_v4 }
 0x1f3   :  { %483 = vmatmul.f32.gmra.mxu1 %v443_v14  ;;  %570 = vmatmul.f32.gmra.mxu3 %v529_v16 }
 0x1f6   :  { %515 = vmatmul.f32.gmra.mxu2 %v415_v61 }
 0x1fb   :  { %486 = vmatmul.f32.gmra.mxu1 %v444_v19  ;;  %573 = vmatmul.f32.gmra.mxu3 %v530_v20 }
 0x260   :  { %v478_v21 = vpop.f32.mrf.mxu1 }
 0x261   :  { %v507_v23 = vpop.f32.mrf.mxu2 }
 0x262   :  { %v508_v42 = vadd.f32 %v507_v23, %v478_v21 }
 0x266   :  { %v565_v22 = vpop.f32.mrf.mxu3 }
 0x267   :  { %v577_v31 = vadd.f32 %v565_v22, %v508_v42 }
 0x268   :  { %v481_v25 = vpop.f32.mrf.mxu1 }
 0x269   :  { %v510_v15 = vpop.f32.mrf.mxu2  ;;  %v590_v33 = vmul.f32 %v577_v31, %v577_v31 }
 0x26a   :  { %v511_v30 = vadd.f32 %v510_v15, %v481_v25 }
 0x26e   :  { %v568_v26 = vpop.f32.mrf.mxu3 }
 0x26f   :  { %v578_v45 = vadd.f32 %v568_v26, %v511_v30 }
 0x270   :  { %v484_v27 = vpop.f32.mrf.mxu1 }
 0x271   :  { %v513_v29 = vpop.f32.mrf.mxu2  ;;  %v591_v24 = vmul.f32 %v578_v45, %v578_v45  ;;  %v581_v34 = vadd.f32 %v578_v45, %v577_v31 }
 0x272   :  { %v514_v60 = vadd.f32 %v513_v29, %v484_v27 }
 0x273   :  { %v594_v52 = vadd.f32 %v591_v24, %v590_v33 }
 0x276   :  { %v571_v38 = vpop.f32.mrf.mxu3 }
 0x277   :  { %v579_v47 = vadd.f32 %v571_v38, %v514_v60 }
 0x278   :  { %v487_v28 = vpop.f32.mrf.mxu1 }
 0x279   :  { %v516_v32 = vpop.f32.mrf.mxu2  ;;  %v592_v35 = vmul.f32 %v579_v47, %v579_v47  ;;  %v582_v37 = vadd.f32 %v581_v34, %v579_v47 }
 0x27a   :  { %v517_v36 = vadd.f32 %v516_v32, %v487_v28 }
 0x27b   :  { %v595_v53 = vadd.f32 %v594_v52, %v592_v35 }
 0x27e   :  { %v574_v50 = vpop.f32.mrf.mxu3 }
 0x27f   :  { %v580_v39 = vadd.f32 %v574_v50, %v517_v36 }
 0x281   :  { %v583_v54 = vadd.f32 %v582_v37, %v580_v39  ;;  %v593_v55 = vmul.f32 %v580_v39, %v580_v39 }
 0x283   :  { %v584_v40 = vrot.slane %v583_v54, 4  ;;  %v596_v56 = vadd.f32 %v595_v53, %v593_v55 }
 0x285   :  { %v585_v59 = vadd.f32 %v584_v40, %v583_v54  ;;  %v597_v41 = vrot.slane %v596_v56, 4 }
 0x287   :  { %v586_v61 = vrot.slane %v585_v59, 2  ;;  %v598_v62 = vadd.f32 %v597_v41, %v596_v56 }
 0x289   :  { %v587_v4 = vadd.f32 %v586_v61, %v585_v59  ;;  %v599_v43 = vrot.slane %v598_v62, 2 }
 0x28b   :  { %v588_v3 = vrot.slane %v587_v4, 1  ;;  %v600_v18 = vadd.f32 %v599_v43, %v598_v62 }
 0x28d   :  { %v589_v5 = vadd.f32 %v588_v3, %v587_v4  ;;  %v601_v44 = vrot.slane %v600_v18, 1 }
 0x28f   :  { %619 = vmatmul.f32.vlgmr.msra.gmra.mxu0 %v589_v5  ;;  %v602_v0 = vadd.f32 %v601_v44, %v600_v18 }
 0x291   :  { %639 = vmatmul.f32.vlgmr.msra.gmra.mxu1 %v602_v0 }
 0x30c   :  { %v620_v46 = vpop.f32.mrf.mxu0 }
 0x30d   :  { %v643_v6 = vmul.f32 %v620_v46, %v620_v46 }
 0x30e   :  { %v640_v48 = vpop.f32.mrf.mxu1 }
 0x30f   :  { %v644_v8 = vsub.f32 %v640_v48, %v643_v6 }
 0x311   :  { %v646_v49 = vadd.f32 1e-05, %v644_v8 }
 0x313   :  { %723 = vrsqrt.f32 %v646_v49  ;;  %vm653_vm6 = vweird.f32 %v646_v49 }
 0x319   :  { %v724_v9 = vpop.eup %723 }
 0x31a   :  { %v648_v10 = vmul.f32 %v724_v9, %v646_v49  ;;  %vm654_vm5 = vweird.f32 %v724_v9 }
 0x31b   :  { %vm655_vm7 = vmor %vm653_vm6, %vm654_vm5 }
 0x31c   :  { %v649_v12 = vmul.f32 %v724_v9, %v648_v10 }
 0x31e   :  { %v650_v11 = vmul.f32 0.5, %v649_v12 }
 0x320   :  { %v651_v13 = vsub.f32 1.5, %v650_v11 }
 0x322   :  { %v652_v51 = vmul.f32 %v724_v9, %v651_v13 }
 0x324   :  { %v656_v14 = vsel %vm655_vm7, %v724_v9, %v652_v51 }
 0x325   :  { %v657_v16 = vmul.f32 %v656_v14, %v645_v2 }
 0x327   :  { %v659_v17 = vmul.f32 %v657_v16, %v620_v46  ;;  %v662_v19 = vperm.slane %v657_v16, 0 }
 0x329   :  { %v660_v20 = vsub.f32 %v658_v7, %v659_v17  ;;  %v664_v21 = vmul.f32 %v662_v19, %v577_v31  ;;  %v665_v22 = vmul.f32 %v662_v19, %v578_v45  ;;  %v666_v25 = vmul.f32 %v662_v19, %v579_v47 }
 0x32a   :  { %v667_v15 = vmul.f32 %v662_v19, %v580_v39 }
 0x32b   :  { %v669_v23 = vperm.slane %v660_v20, 0 }
 0x32d   :  { %v671_v26 = vadd.f32 %v669_v23, %v664_v21  ;;  %v672_v27 = vadd.f32 %v669_v23, %v665_v22  ;;  %v673_v29 = vadd.f32 %v669_v23, %v666_v25  ;;  %v674_v30 = vadd.f32 %v669_v23, %v667_v15 }
 0x32f   :  { %v675_v38 = vadd.f32 %v671_v26, %v926_v57  ;;  %v676_v42 = vadd.f32 %v672_v27, %v929_v58  ;;  %v677_v60 = vadd.f32 %v673_v29, %v936_v63  ;;  %v678_v28 = vadd.f32 %v674_v30, %v942_v1 }
 0x331   :  { %v679_v32 = vmax.f32 %v675_v38, 0.0  ;;  %v680_v24 = vmax.f32 %v676_v42, 0.0  ;;  %v681_v33 = vmax.f32 %v677_v60, 0.0  ;;  %v682_v45 = vmax.f32 %v678_v28, 0.0 }
 0x333   :  { %683 = vst [vmem:[#allocation8] sm:$0xff] %v679_v32 }
 0x334   :  { %684 = vst [vmem:[#allocation8 + $0x8] sm:$0xff] %v680_v24 }
 0x335   :  { %685 = vst [vmem:[#allocation8 + $0x10] sm:$0xff] %v681_v33 }
 0x336   :  { %686 = vst [vmem:[#allocation8 + $0x18] sm:$0xff] %v682_v45 }
 0x337   :  { %699 = dma.vmem_to_hbm [thread:$0]  %s692_s8, 512, %s694_s11, [#allocation4], %s828_s17, %s828_s17, %s829_s18  }
 0x338   :  { %825 = dma.done.wait [#allocation4], 512  }
 0x339   :  { %826 = vsyncadd [#allocation4], 4294966784 }
 0x33a   :  { %704 = vsyncpa [#allocation3], 1 }
 0x33b   :  { %705 = vsyncpa [#allocation6], 1 }
 0x33c   :  { %706 = vsyncpa [#allocation4], 1 }

</bundles_post_ra>
